<compile_context>
chip_gen: v7x
topology: tpu7x:2x2x1
jax: 0.10.0
libtpu: 0.0.40
codegen_flags: <defaults>
</compile_context>

<pallas_src>
import math

import jax
import jax.numpy as jnp
from jax import lax
from jax.experimental import pallas as pl
from jax.experimental.pallas import tpu as pltpu

# ----------------------------- static problem sizes ------------------------------
N, C, H, W = 2, 4, 16, 16          # input images, NCHW
GRID_H = GRID_W = 2                # image_split: 2x2 quadrants
PH, PW = H // GRID_H, W // GRID_W  # 8 x 8 patches
SPLITS = GRID_H * GRID_W           # 4
NS = N * SPLITS                    # 8 fused rows (split-major: row = s*N + n)
PATCH_DIM = C * PH * PW            # 256
D = 32                             # encoder output feature dim per split
NUM_ACTIONS = 8
HEAD_OUT = NUM_ACTIONS + 1         # fused policy(8) + value(1)
ENC_OUT_DIM = SPLITS * D           # 128 -> flattened input to the heads
SCALE = 1.0 / math.sqrt(D)
NEG_INF = -1e30


# --------------------------------- Pallas kernel ---------------------------------
def _policy4_kernel(xp_ref, we_ref, be_ref, pos_ref, bias_ref,
                    wqkv_ref, bqkv_ref, wo_ref, bo_ref,
                    whead_ref, bhead_ref, out_ref):
    # Whole (batch-fused) problem in one invocation.
    xp = xp_ref[...]                                                     # (NS, PATCH_DIM)

    # encoder: Linear + ReLU
    h = jnp.dot(xp, we_ref[...], preferred_element_type=jnp.float32) + be_ref[...]
    h = jnp.maximum(h, 0.0)                                              # (NS, D)

    # pos_encoder: additive positional encoding (already repeated per batch row)
    h = h + pos_ref[...]

    # transformer_block(x, x, x): fused single QKV projection
    qkv = jnp.dot(h, wqkv_ref[...], preferred_element_type=jnp.float32) + bqkv_ref[...]
    q = qkv[:, 0:D]
    k = qkv[:, D:2 * D]
    v = qkv[:, 2 * D:3 * D]

    # single (NS, NS) scores matmul, cross-batch pairs masked out additively
    scores = lax.dot_general(q, k, (((1,), (1,)), ((), ())),
                             preferred_element_type=jnp.float32) * SCALE  # (NS, NS)
    scores = scores + bias_ref[...]                                       # 0 / -1e30
    m = jnp.max(scores, axis=-1, keepdims=True)
    e = jnp.exp(scores - m)
    p = e / jnp.sum(e, axis=-1, keepdims=True)
    attn = jnp.dot(p, v, preferred_element_type=jnp.float32)              # (NS, D)
    out = h + jnp.dot(attn, wo_ref[...], preferred_element_type=jnp.float32) + bo_ref[...]

    # fused policy+value head:
    #   flat[n, s*D + d] == out[s*N + n, d]  (split-major row order)
    #   res = flat @ W_head + b_head, computed as a sum of contiguous (N, D) blocks
    res = bhead_ref[...]                                                  # (1, HEAD_OUT)
    for s in range(SPLITS):
        res = res + jnp.dot(out[s * N:(s + 1) * N, :], whead_ref[s],
                            preferred_element_type=jnp.float32)           # (N, HEAD_OUT)
    out_ref[...] = res                                                    # single store


def policy4_forward(x, params):
    """x: (N, C, H, W) float32.  Returns (logits, value) with shapes (N, A), (N,)."""
    # ----- image_split (glue): NCHW -> (N, SPLITS, PATCH_DIM), then split-major rows
    xs = x.reshape(N, C, GRID_H, PH, GRID_W, PW)
    xs = jnp.transpose(xs, (0, 2, 4, 1, 3, 5))                  # (N, gh, gw, C, PH, PW)
    xp = xs.reshape(N, SPLITS, PATCH_DIM)
    xp_sm = jnp.transpose(xp, (1, 0, 2)).reshape(NS, PATCH_DIM).astype(jnp.float32)

    # positional encoding repeated per batch row (row s*N + n -> pe[s])
    pos_rep = jnp.repeat(params["pos"], N, axis=0)              # (NS, D)

    # additive attention mask: rows/cols of the same batch (same r % N) attend
    r = jnp.arange(NS)
    bias = jnp.where((r[:, None] % N) == (r[None, :] % N), 0.0, NEG_INF)
    bias = bias.astype(jnp.float32)                             # (NS, NS)

    full = lambda shape: pl.BlockSpec(shape, lambda i: (0,) * len(shape))

    grid_spec = pltpu.PrefetchScalarGridSpec(
        num_scalar_prefetch=0,
        grid=(1,),                                              # whole batch fused
        in_specs=[
            full((NS, PATCH_DIM)),                              # x patches (split-major)
            full((PATCH_DIM, D)), full((1, D)),                 # encoder W, b
            full((NS, D)),                                      # positional encoding
            full((NS, NS)),                                     # attention mask bias
            full((D, 3 * D)), full((1, 3 * D)),                 # fused Wqkv, bqkv
            full((D, D)), full((1, D)),                         # Wo, bo
            full((SPLITS, D, HEAD_OUT)), full((1, HEAD_OUT)),   # fused policy+value head
        ],
        out_specs=pl.BlockSpec((N, HEAD_OUT), lambda i: (0, 0)),
    )

    res = pl.pallas_call(
        _policy4_kernel,
        out_shape=jax.ShapeDtypeStruct((N, HEAD_OUT), jnp.float32),
        grid_spec=grid_spec,
        compiler_params=pltpu.CompilerParams(dimension_semantics=("arbitrary",)),
    )(xp_sm,
      params["we"], params["be"], pos_rep, bias,
      params["wqkv"], params["bqkv"], params["wo"], params["bo"],
      params["whead"], params["bhead"])

    logits = res[:, :NUM_ACTIONS]
    value = res[:, NUM_ACTIONS]          # mirrors the PyTorch .squeeze(1)
    return logits, value


# ----------------------------- deterministic parameters ---------------------------
def make_params():
    key = jax.random.PRNGKey(0)
    ks = jax.random.split(key, 10)

    def normal(k, shape, fan_in):
        return jax.random.normal(k, shape, jnp.float32) / math.sqrt(fan_in)

    def orthogonal(k, rows, cols, gain):
        a = jax.random.normal(k, (rows, cols), jnp.float32)
        q, _ = jnp.linalg.qr(a)
        return (gain * q).astype(jnp.float32)

    # sinusoidal positional encoding (SPLITS, D)
    pos = jnp.arange(SPLITS, dtype=jnp.float32)[:, None]
    i = jnp.arange(D, dtype=jnp.float32)[None, :]
    angle = pos / jnp.power(10000.0, (2.0 * jnp.floor(i / 2.0)) / D)
    pe = jnp.where((jnp.arange(D) % 2 == 0)[None, :], jnp.sin(angle), jnp.cos(angle))

    # fused QKV projection
    wq = normal(ks[1], (D, D), D)
    wk = normal(ks[2], (D, D), D)
    wv = normal(ks[3], (D, D), D)
    wqkv = jnp.concatenate([wq, wk, wv], axis=1)                     # (D, 3D)
    bqkv = jnp.zeros((1, 3 * D), jnp.float32)

    # fused policy + value head (flat index s*D + d maps to [s, d, :])
    wpol = orthogonal(ks[5], ENC_OUT_DIM, NUM_ACTIONS, gain=0.01)    # (128, 8)
    wval = orthogonal(ks[6], ENC_OUT_DIM, 1, gain=1.0)               # (128, 1)
    whead = jnp.concatenate([wpol, wval], axis=1)                    # (128, 9)
    bhead = jnp.zeros((1, HEAD_OUT), jnp.float32)

    return dict(
        we=normal(ks[0], (PATCH_DIM, D), PATCH_DIM), be=jnp.zeros((1, D), jnp.float32),
        pos=pe.astype(jnp.float32),
        wqkv=wqkv, bqkv=bqkv,
        wo=normal(ks[4], (D, D), D), bo=jnp.zeros((1, D), jnp.float32),
        whead=whead.reshape(SPLITS, D, HEAD_OUT), bhead=bhead,
    )


# ------------------------------- pure-JAX reference --------------------------------
def reference_forward(x, p):
    xs = x.reshape(N, C, GRID_H, PH, GRID_W, PW)
    xs = jnp.transpose(xs, (0, 2, 4, 1, 3, 5)).reshape(N, SPLITS, PATCH_DIM)
    h = jnp.maximum(jnp.einsum("nsp,pd->nsd", xs, p["we"]) + p["be"][0], 0.0)
    h = h + p["pos"][None]
    qkv = jnp.einsum("nsd,de->nse", h, p["wqkv"]) + p["bqkv"][0]
    q, k, v = qkv[..., :D], qkv[..., D:2 * D], qkv[..., 2 * D:]
    s = jnp.einsum("nqd,nkd->nqk", q, k) * SCALE
    a = jax.nn.softmax(s, axis=-1)
    o = h + jnp.einsum("nqk,nkd->nqd", a, v) @ p["wo"] + p["bo"][0]
    flat = o.reshape(N, ENC_OUT_DIM)
    res = flat @ p["whead"].reshape(ENC_OUT_DIM, HEAD_OUT) + p["bhead"][0]
    return res[:, :NUM_ACTIONS], res[:, NUM_ACTIONS]


if __name__ == "__main__":
    params = make_params()
    x = jax.random.normal(jax.random.PRNGKey(0), (N, C, H, W), jnp.float32)

    logits, value = jax.jit(policy4_forward)(x, params)
    jax.block_until_ready((logits, value))

    ref_logits, ref_value = reference_forward(x, params)
    assert logits.shape == (N, NUM_ACTIONS) and value.shape == (N,)
    assert jnp.allclose(logits, ref_logits, atol=1e-4, rtol=1e-4)
    assert jnp.allclose(value, ref_value, atol=1e-4, rtol=1e-4)

    print("KERNEL_OK")
</pallas_src>

<mosaic_0001>
module attributes {stable_mosaic.version = 11 : i64} {
  func.func @_policy4_kernel(%arg0: i32, %arg1: memref<8x256xf32, #tpu.memory_space<vmem>>, %arg2: memref<256x32xf32, #tpu.memory_space<vmem>>, %arg3: memref<1x32xf32, #tpu.memory_space<vmem>>, %arg4: memref<8x32xf32, #tpu.memory_space<vmem>>, %arg5: memref<8x8xf32, #tpu.memory_space<vmem>>, %arg6: memref<32x96xf32, #tpu.memory_space<vmem>>, %arg7: memref<1x96xf32, #tpu.memory_space<vmem>>, %arg8: memref<32x32xf32, #tpu.memory_space<vmem>>, %arg9: memref<1x32xf32, #tpu.memory_space<vmem>>, %arg10: memref<4x32x9xf32, #tpu.memory_space<vmem>>, %arg11: memref<1x9xf32, #tpu.memory_space<vmem>>, %arg12: memref<2x9xf32, #tpu.memory_space<vmem>>) attributes {dimension_semantics = [#tpu.dimension_semantics<arbitrary>], iteration_bounds = array<i64: 1>, scalar_prefetch = 0 : i64, scratch_operands = 0 : i64, tpu.core_type = #tpu.core_type<tc>, window_params = [{pipeline_mode = #tpu.pipeline_mode<synchronous>, transform_indices = @transform_0, window_bounds = array<i64: 8, 256>}, {pipeline_mode = #tpu.pipeline_mode<synchronous>, transform_indices = @transform_1, window_bounds = array<i64: 256, 32>}, {pipeline_mode = #tpu.pipeline_mode<synchronous>, transform_indices = @transform_2, window_bounds = array<i64: 1, 32>}, {pipeline_mode = #tpu.pipeline_mode<synchronous>, transform_indices = @transform_3, window_bounds = array<i64: 8, 32>}, {pipeline_mode = #tpu.pipeline_mode<synchronous>, transform_indices = @transform_4, window_bounds = array<i64: 8, 8>}, {pipeline_mode = #tpu.pipeline_mode<synchronous>, transform_indices = @transform_5, window_bounds = array<i64: 32, 96>}, {pipeline_mode = #tpu.pipeline_mode<synchronous>, transform_indices = @transform_6, window_bounds = array<i64: 1, 96>}, {pipeline_mode = #tpu.pipeline_mode<synchronous>, transform_indices = @transform_7, window_bounds = array<i64: 32, 32>}, {pipeline_mode = #tpu.pipeline_mode<synchronous>, transform_indices = @transform_8, window_bounds = array<i64: 1, 32>}, {pipeline_mode = #tpu.pipeline_mode<synchronous>, transform_indices = @transform_9, window_bounds = array<i64: 4, 32, 9>}, {pipeline_mode = #tpu.pipeline_mode<synchronous>, transform_indices = @transform_10, window_bounds = array<i64: 1, 9>}, {pipeline_mode = #tpu.pipeline_mode<synchronous>, transform_indices = @transform_11, window_bounds = array<i64: 2, 9>}]} {
    %c0 = arith.constant 0 : index
    %c0_0 = arith.constant 0 : index
    %0 = vector.load %arg1[%c0, %c0_0] : memref<8x256xf32, #tpu.memory_space<vmem>>, vector<8x256xf32>
    %c0_1 = arith.constant 0 : index
    %c0_2 = arith.constant 0 : index
    %1 = vector.load %arg2[%c0_1, %c0_2] : memref<256x32xf32, #tpu.memory_space<vmem>>, vector<256x32xf32>
    %cst = arith.constant dense<0.000000e+00> : vector<8x32xf32>
    %2 = tpu.matmul %0, %1, %cst {dimension_numbers = #tpu.dot_dimension_numbers<[1], [0], [0], [1], [0, 0, 1, 1], [], []>} : vector<8x256xf32>, vector<256x32xf32>, vector<8x32xf32> -> vector<8x32xf32>
    %c0_3 = arith.constant 0 : index
    %c0_4 = arith.constant 0 : index
    %3 = vector.load %arg3[%c0_3, %c0_4] : memref<1x32xf32, #tpu.memory_space<vmem>>, vector<1x32xf32>
    %4 = vector.broadcast %3 : vector<1x32xf32> to vector<8x32xf32>
    %5 = arith.addf %2, %4 : vector<8x32xf32>
    %cst_5 = arith.constant 0.000000e+00 : f32
    %6 = vector.broadcast %cst_5 : f32 to vector<8x32xf32>
    %7 = arith.maximumf %5, %6 : vector<8x32xf32>
    %c0_6 = arith.constant 0 : index
    %c0_7 = arith.constant 0 : index
    %8 = vector.load %arg4[%c0_6, %c0_7] : memref<8x32xf32, #tpu.memory_space<vmem>>, vector<8x32xf32>
    %9 = arith.addf %7, %8 : vector<8x32xf32>
    %c0_8 = arith.constant 0 : index
    %c0_9 = arith.constant 0 : index
    %10 = vector.load %arg6[%c0_8, %c0_9] : memref<32x96xf32, #tpu.memory_space<vmem>>, vector<32x96xf32>
    %cst_10 = arith.constant dense<0.000000e+00> : vector<8x96xf32>
    %11 = tpu.matmul %9, %10, %cst_10 {dimension_numbers = #tpu.dot_dimension_numbers<[1], [0], [0], [1], [0, 0, 1, 1], [], []>} : vector<8x32xf32>, vector<32x96xf32>, vector<8x96xf32> -> vector<8x96xf32>
    %c0_11 = arith.constant 0 : index
    %c0_12 = arith.constant 0 : index
    %12 = vector.load %arg7[%c0_11, %c0_12] : memref<1x96xf32, #tpu.memory_space<vmem>>, vector<1x96xf32>
    %13 = vector.broadcast %12 : vector<1x96xf32> to vector<8x96xf32>
    %14 = arith.addf %11, %13 : vector<8x96xf32>
    %15 = vector.extract_strided_slice %14 {offsets = [0, 0], sizes = [8, 32], strides = [1, 1]} : vector<8x96xf32> to vector<8x32xf32>
    %16 = vector.extract_strided_slice %14 {offsets = [0, 32], sizes = [8, 32], strides = [1, 1]} : vector<8x96xf32> to vector<8x32xf32>
    %17 = vector.extract_strided_slice %14 {offsets = [0, 64], sizes = [8, 32], strides = [1, 1]} : vector<8x96xf32> to vector<8x32xf32>
    %cst_13 = arith.constant dense<0.000000e+00> : vector<8x8xf32>
    %18 = tpu.matmul %15, %16, %cst_13 {dimension_numbers = #tpu.dot_dimension_numbers<[1], [1], [0], [0], [0, 0, 1, 0], [], []>} : vector<8x32xf32>, vector<8x32xf32>, vector<8x8xf32> -> vector<8x8xf32>
    %cst_14 = arith.constant 0.176776692 : f32
    %19 = vector.broadcast %cst_14 : f32 to vector<8x8xf32>
    %20 = arith.mulf %18, %19 : vector<8x8xf32>
    %c0_15 = arith.constant 0 : index
    %c0_16 = arith.constant 0 : index
    %21 = vector.load %arg5[%c0_15, %c0_16] : memref<8x8xf32, #tpu.memory_space<vmem>>, vector<8x8xf32>
    %22 = arith.addf %20, %21 : vector<8x8xf32>
    %cst_17 = arith.constant dense<0xFF800000> : vector<8xf32>
    %23 = vector.multi_reduction <maximumf>, %22, %cst_17 [1] : vector<8x8xf32> to vector<8xf32>
    %24 = vector.shape_cast %23 : vector<8xf32> to vector<8x1xf32>
    %25 = vector.broadcast %24 : vector<8x1xf32> to vector<8x8xf32>
    %26 = arith.subf %22, %25 : vector<8x8xf32>
    %27 = math.exp %26 : vector<8x8xf32>
    %cst_18 = arith.constant dense<0.000000e+00> : vector<8xf32>
    %28 = vector.multi_reduction <add>, %27, %cst_18 [1] : vector<8x8xf32> to vector<8xf32>
    %29 = vector.shape_cast %28 : vector<8xf32> to vector<8x1xf32>
    %30 = vector.broadcast %29 : vector<8x1xf32> to vector<8x8xf32>
    %31 = arith.divf %27, %30 : vector<8x8xf32>
    %cst_19 = arith.constant dense<0.000000e+00> : vector<8x32xf32>
    %32 = tpu.matmul %31, %17, %cst_19 {dimension_numbers = #tpu.dot_dimension_numbers<[1], [0], [0], [1], [0, 0, 1, 1], [], []>} : vector<8x8xf32>, vector<8x32xf32>, vector<8x32xf32> -> vector<8x32xf32>
    %c0_20 = arith.constant 0 : index
    %c0_21 = arith.constant 0 : index
    %33 = vector.load %arg8[%c0_20, %c0_21] : memref<32x32xf32, #tpu.memory_space<vmem>>, vector<32x32xf32>
    %cst_22 = arith.constant dense<0.000000e+00> : vector<8x32xf32>
    %34 = tpu.matmul %32, %33, %cst_22 {dimension_numbers = #tpu.dot_dimension_numbers<[1], [0], [0], [1], [0, 0, 1, 1], [], []>} : vector<8x32xf32>, vector<32x32xf32>, vector<8x32xf32> -> vector<8x32xf32>
    %35 = arith.addf %9, %34 : vector<8x32xf32>
    %c0_23 = arith.constant 0 : index
    %c0_24 = arith.constant 0 : index
    %36 = vector.load %arg9[%c0_23, %c0_24] : memref<1x32xf32, #tpu.memory_space<vmem>>, vector<1x32xf32>
    %37 = vector.broadcast %36 : vector<1x32xf32> to vector<8x32xf32>
    %38 = arith.addf %35, %37 : vector<8x32xf32>
    %c0_25 = arith.constant 0 : index
    %c0_26 = arith.constant 0 : index
    %39 = vector.load %arg11[%c0_25, %c0_26] : memref<1x9xf32, #tpu.memory_space<vmem>>, vector<1x9xf32>
    %40 = vector.extract_strided_slice %38 {offsets = [0, 0], sizes = [2, 32], strides = [1, 1]} : vector<8x32xf32> to vector<2x32xf32>
    %c0_27 = arith.constant 0 : index
    %c0_28 = arith.constant 0 : index
    %c0_29 = arith.constant 0 : index
    %41 = vector.load %arg10[%c0_27, %c0_28, %c0_29] : memref<4x32x9xf32, #tpu.memory_space<vmem>>, vector<1x32x9xf32>
    %42 = vector.shape_cast %41 : vector<1x32x9xf32> to vector<32x9xf32>
    %cst_30 = arith.constant dense<0.000000e+00> : vector<2x9xf32>
    %43 = tpu.matmul %40, %42, %cst_30 {dimension_numbers = #tpu.dot_dimension_numbers<[1], [0], [0], [1], [0, 0, 1, 1], [], []>} : vector<2x32xf32>, vector<32x9xf32>, vector<2x9xf32> -> vector<2x9xf32>
    %44 = vector.broadcast %39 : vector<1x9xf32> to vector<2x9xf32>
    %45 = arith.addf %44, %43 : vector<2x9xf32>
    %46 = vector.extract_strided_slice %38 {offsets = [2, 0], sizes = [2, 32], strides = [1, 1]} : vector<8x32xf32> to vector<2x32xf32>
    %c1 = arith.constant 1 : index
    %c0_31 = arith.constant 0 : index
    %c0_32 = arith.constant 0 : index
    %47 = vector.load %arg10[%c1, %c0_31, %c0_32] : memref<4x32x9xf32, #tpu.memory_space<vmem>>, vector<1x32x9xf32>
    %48 = vector.shape_cast %47 : vector<1x32x9xf32> to vector<32x9xf32>
    %cst_33 = arith.constant dense<0.000000e+00> : vector<2x9xf32>
    %49 = tpu.matmul %46, %48, %cst_33 {dimension_numbers = #tpu.dot_dimension_numbers<[1], [0], [0], [1], [0, 0, 1, 1], [], []>} : vector<2x32xf32>, vector<32x9xf32>, vector<2x9xf32> -> vector<2x9xf32>
    %50 = arith.addf %45, %49 : vector<2x9xf32>
    %51 = vector.extract_strided_slice %38 {offsets = [4, 0], sizes = [2, 32], strides = [1, 1]} : vector<8x32xf32> to vector<2x32xf32>
    %c2 = arith.constant 2 : index
    %c0_34 = arith.constant 0 : index
    %c0_35 = arith.constant 0 : index
    %52 = vector.load %arg10[%c2, %c0_34, %c0_35] : memref<4x32x9xf32, #tpu.memory_space<vmem>>, vector<1x32x9xf32>
    %53 = vector.shape_cast %52 : vector<1x32x9xf32> to vector<32x9xf32>
    %cst_36 = arith.constant dense<0.000000e+00> : vector<2x9xf32>
    %54 = tpu.matmul %51, %53, %cst_36 {dimension_numbers = #tpu.dot_dimension_numbers<[1], [0], [0], [1], [0, 0, 1, 1], [], []>} : vector<2x32xf32>, vector<32x9xf32>, vector<2x9xf32> -> vector<2x9xf32>
    %55 = arith.addf %50, %54 : vector<2x9xf32>
    %56 = vector.extract_strided_slice %38 {offsets = [6, 0], sizes = [2, 32], strides = [1, 1]} : vector<8x32xf32> to vector<2x32xf32>
    %c3 = arith.constant 3 : index
    %c0_37 = arith.constant 0 : index
    %c0_38 = arith.constant 0 : index
    %57 = vector.load %arg10[%c3, %c0_37, %c0_38] : memref<4x32x9xf32, #tpu.memory_space<vmem>>, vector<1x32x9xf32>
    %58 = vector.shape_cast %57 : vector<1x32x9xf32> to vector<32x9xf32>
    %cst_39 = arith.constant dense<0.000000e+00> : vector<2x9xf32>
    %59 = tpu.matmul %56, %58, %cst_39 {dimension_numbers = #tpu.dot_dimension_numbers<[1], [0], [0], [1], [0, 0, 1, 1], [], []>} : vector<2x32xf32>, vector<32x9xf32>, vector<2x9xf32> -> vector<2x9xf32>
    %60 = arith.addf %55, %59 : vector<2x9xf32>
    %c0_40 = arith.constant 0 : index
    %c0_41 = arith.constant 0 : index
    %61 = vector.load %arg12[%c0_40, %c0_41] : memref<2x9xf32, #tpu.memory_space<vmem>>, vector<2x9xf32>
    tpu.vector_store %arg12[%c0_40, %c0_41], %60 {strides = array<i32>} : memref<2x9xf32, #tpu.memory_space<vmem>>, vector<2x9xf32>,
    return
  }
  func.func @transform_0(%arg0: i32) -> (i32, i32) {
    %c0_i32 = arith.constant 0 : i32
    %c0_i32_0 = arith.constant 0 : i32
    %c0_i32_1 = arith.constant 0 : i32
    return %c0_i32, %c0_i32_0 : i32, i32
  }
  func.func @transform_1(%arg0: i32) -> (i32, i32) {
    %c0_i32 = arith.constant 0 : i32
    %c0_i32_0 = arith.constant 0 : i32
    %c0_i32_1 = arith.constant 0 : i32
    return %c0_i32, %c0_i32_0 : i32, i32
  }
  func.func @transform_2(%arg0: i32) -> (i32, i32) {
    %c0_i32 = arith.constant 0 : i32
    %c0_i32_0 = arith.constant 0 : i32
    %c0_i32_1 = arith.constant 0 : i32
    return %c0_i32, %c0_i32_0 : i32, i32
  }
  func.func @transform_3(%arg0: i32) -> (i32, i32) {
    %c0_i32 = arith.constant 0 : i32
    %c0_i32_0 = arith.constant 0 : i32
    %c0_i32_1 = arith.constant 0 : i32
    return %c0_i32, %c0_i32_0 : i32, i32
  }
  func.func @transform_4(%arg0: i32) -> (i32, i32) {
    %c0_i32 = arith.constant 0 : i32
    %c0_i32_0 = arith.constant 0 : i32
    %c0_i32_1 = arith.constant 0 : i32
    return %c0_i32, %c0_i32_0 : i32, i32
  }
  func.func @transform_5(%arg0: i32) -> (i32, i32) {
    %c0_i32 = arith.constant 0 : i32
    %c0_i32_0 = arith.constant 0 : i32
    %c0_i32_1 = arith.constant 0 : i32
    return %c0_i32, %c0_i32_0 : i32, i32
  }
  func.func @transform_6(%arg0: i32) -> (i32, i32) {
    %c0_i32 = arith.constant 0 : i32
    %c0_i32_0 = arith.constant 0 : i32
    %c0_i32_1 = arith.constant 0 : i32
    return %c0_i32, %c0_i32_0 : i32, i32
  }
  func.func @transform_7(%arg0: i32) -> (i32, i32) {
    %c0_i32 = arith.constant 0 : i32
    %c0_i32_0 = arith.constant 0 : i32
    %c0_i32_1 = arith.constant 0 : i32
    return %c0_i32, %c0_i32_0 : i32, i32
  }
  func.func @transform_8(%arg0: i32) -> (i32, i32) {
    %c0_i32 = arith.constant 0 : i32
    %c0_i32_0 = arith.constant 0 : i32
    %c0_i32_1 = arith.constant 0 : i32
    return %c0_i32, %c0_i32_0 : i32, i32
  }
  func.func @transform_9(%arg0: i32) -> (i32, i32, i32) {
    %c0_i32 = arith.constant 0 : i32
    %c0_i32_0 = arith.constant 0 : i32
    %c0_i32_1 = arith.constant 0 : i32
    %c0_i32_2 = arith.constant 0 : i32
    return %c0_i32, %c0_i32_0, %c0_i32_1 : i32, i32, i32
  }
  func.func @transform_10(%arg0: i32) -> (i32, i32) {
    %c0_i32 = arith.constant 0 : i32
    %c0_i32_0 = arith.constant 0 : i32
    %c0_i32_1 = arith.constant 0 : i32
    return %c0_i32, %c0_i32_0 : i32, i32
  }
  func.func @transform_11(%arg0: i32) -> (i32, i32) {
    %c0_i32 = arith.constant 0 : i32
    %c0_i32_0 = arith.constant 0 : i32
    %c0_i32_1 = arith.constant 0 : i32
    return %c0_i32, %c0_i32_0 : i32, i32
  }
}

</mosaic_0001>

<bundles_post_ra>
// kernel: policy4_forward.1
= control target key start
LH: loop header
LB: loop body
LE: loop exit
PB: predicated region body
PF: predicated region fallthrough
CT: control target
= control target key end

     0   :  { %v1073_v53 = vmov 0.0|0.0   ;;  %vm1074_vm0 = vmmov 0   ;;  %v1075_v57 = vmov 0.0   ;;  %vm163_vm1 = vcmask 261120   ;;  %s1378_s1 = inlined_call_operand.vmem [shape: f32[256,32], index: 1, kind: input, shape index: {}]   ;;  %s1379_s0 = inlined_call_operand.vmem [shape: f32[8,256], index: 0, kind: input, shape index: {}]   ;;  %s1380_s5 = inlined_call_operand.vmem [shape: f32[32,96], index: 5, kind: input, shape index: {}]   ;;  %s1381_s2 = inlined_call_operand.vmem [shape: f32[1,32], index: 2, kind: input, shape index: {}]   ;;  %s1382_s3 = inlined_call_operand.vmem [shape: f32[8,32], index: 3, kind: input, shape index: {}]   ;;  %s1383_s6 = inlined_call_operand.vmem [shape: f32[1,96], index: 6, kind: input, shape index: {}]   ;;  %s1384_s4 = inlined_call_operand.vmem [shape: f32[8,8], index: 4, kind: input, shape index: {}]   ;;  %s1385_s7 = inlined_call_operand.vmem [shape: f32[32,32], index: 7, kind: input, shape index: {}]   ;;  %s1386_s9 = inlined_call_operand.vmem [shape: f32[4,32,9], index: 9, kind: input, shape index: {}]   ;;  %s1387_s8 = inlined_call_operand.vmem [shape: f32[1,32], index: 8, kind: input, shape index: {}]   ;;  %s1388_s10 = inlined_call_operand.vmem [shape: f32[1,9], index: 10, kind: input, shape index: {}]   ;;  %s1389_s11 = inlined_call_operand.vmem [shape: f32[2,9], index: 11, kind: output, shape index: {}]  }
   0x1   :  { %v56_v0 = vld [vmem:[%s1378_s1 + $0x80] sm:$0xff]  ;;  %v57_v1 = vld [vmem:[%s1378_s1 + $0x88] sm:$0xff]  ;;  %v58_v5 = vld [vmem:[%s1378_s1 + $0x90] sm:$0xff]  ;;  %929 = vmatprep.subr.mxu1 %v1075_v57  ;;  %931 = vmatprep.mubr.msk.f32.mxu1 %vm1074_vm0, %v1075_v57  ;;  %vm317_vm2 = vcmask 64512   ;;  %vm813_vm3 = vcmask 66560  }
   0x2   :  { %v40_v2 = vld [vmem:[%s1378_s1] sm:$0xff]  ;;  %v989_v3 = vpack.c.bf16 %v57_v1, %v56_v0  ;;  %v41_v4 = vld [vmem:[%s1378_s1 + $0x8] sm:$0xff]  ;;  %v59_v6 = vld [vmem:[%s1378_s1 + $0x98] sm:$0xff] }
   0x3   :  { %v991_v7 = vpack.c.bf16 %v41_v4, %v40_v2  ;;  %v993_v8 = vpack.c.bf16 %v59_v6, %v58_v5  ;;  %v42_v9 = vld [vmem:[%s1378_s1 + $0x10] sm:$0xff]  ;;  %v43_v10 = vld [vmem:[%s1378_s1 + $0x18] sm:$0xff]  ;;  %v60_v11 = vld [vmem:[%s1378_s1 + $0xa0] sm:$0xff] }
   0x4   :  { %990 = vmatprep.subr.bf16.mxu0 %v989_v3  ;;  %v61_v12 = vld [vmem:[%s1378_s1 + $0xa8] sm:$0xff]  ;;  %v995_v13 = vpack.c.bf16 %v43_v10, %v42_v9  ;;  %v44_v15 = vld [vmem:[%s1378_s1 + $0x20] sm:$0xff]  ;;  %v62_v17 = vld [vmem:[%s1378_s1 + $0xb0] sm:$0xff] }
   0x5   :  { %992 = vmatpush3.bf16.msra.mxu0 %v991_v7  ;;  %v997_v14 = vpack.c.bf16 %v61_v12, %v60_v11  ;;  %v45_v16 = vld [vmem:[%s1378_s1 + $0x28] sm:$0xff]  ;;  %v63_v18 = vld [vmem:[%s1378_s1 + $0xb8] sm:$0xff]  ;;  %v46_v21 = vld [vmem:[%s1378_s1 + $0x30] sm:$0xff] }
   0x6   :  { %994 = vmatprep.subr.bf16.mxu0 %v993_v8  ;;  %v999_v19 = vpack.c.bf16 %v45_v16, %v44_v15  ;;  %v1001_v20 = vpack.c.bf16 %v63_v18, %v62_v17  ;;  %v47_v22 = vld [vmem:[%s1378_s1 + $0x38] sm:$0xff]  ;;  %v64_v23 = vld [vmem:[%s1378_s1 + $0xc0] sm:$0xff]  ;;  %v65_v24 = vld [vmem:[%s1378_s1 + $0xc8] sm:$0xff] }
   0x7   :  { %v39_v25 = vld [vmem:[%s1379_s0 + $0x8] sm:$0xff]  ;;  %v1003_v26 = vpack.c.bf16 %v47_v22, %v46_v21  ;;  %v1005_v27 = vpack.c.bf16 %v65_v24, %v64_v23  ;;  %v48_v28 = vld [vmem:[%s1378_s1 + $0x40] sm:$0xff]  ;;  %v66_v30 = vld [vmem:[%s1378_s1 + $0xd0] sm:$0xff] }
   0x8   :  { %143 = vmatprep.mubr.f32.mxu0 %v39_v25  ;;  %v49_v29 = vld [vmem:[%s1378_s1 + $0x48] sm:$0xff]  ;;  %v67_v31 = vld [vmem:[%s1378_s1 + $0xd8] sm:$0xff]  ;;  %v50_v34 = vld [vmem:[%s1378_s1 + $0x50] sm:$0xff] }
   0x9   :  { %996 = vmatpush3.bf16.msra.mxu0 %v995_v13  ;;  %v1007_v32 = vpack.c.bf16 %v49_v29, %v48_v28  ;;  %v1009_v33 = vpack.c.bf16 %v67_v31, %v66_v30  ;;  %v51_v35 = vld [vmem:[%s1378_s1 + $0x58] sm:$0xff]  ;;  %v68_v36 = vld [vmem:[%s1378_s1 + $0xe0] sm:$0xff]  ;;  %v69_v37 = vld [vmem:[%s1378_s1 + $0xe8] sm:$0xff] }
   0xa   :  { %998 = vmatprep.subr.bf16.mxu0 %v997_v14  ;;  %v1011_v38 = vpack.c.bf16 %v51_v35, %v50_v34  ;;  %v1013_v39 = vpack.c.bf16 %v69_v37, %v68_v36  ;;  %v52_v40 = vld [vmem:[%s1378_s1 + $0x60] sm:$0xff]  ;;  %v53_v41 = vld [vmem:[%s1378_s1 + $0x68] sm:$0xff]  ;;  %v70_v42 = vld [vmem:[%s1378_s1 + $0xf0] sm:$0xff] }
   0xb   :  { %v71_v43 = vld [vmem:[%s1378_s1 + $0xf8] sm:$0xff]  ;;  %v1015_v44 = vpack.c.bf16 %v53_v41, %v52_v40  ;;  %v54_v46 = vld [vmem:[%s1378_s1 + $0x70] sm:$0xff]  ;;  %v38_v49 = vld [vmem:[%s1379_s0] sm:$0xff] }
   0xc   :  { %v1017_v45 = vpack.c.bf16 %v71_v43, %v70_v42  ;;  %v55_v47 = vld [vmem:[%s1378_s1 + $0x78] sm:$0xff]  ;;  %v152_v50 = vld [vmem:[%s1380_s5] sm:$0xff]  ;;  %v153_v51 = vld [vmem:[%s1380_s5 + $0x8] sm:$0xff] }
   0xd   :  { %1000 = vmatpush3.bf16.msra.mxu0 %v999_v19  ;;  %v1019_v48 = vpack.c.bf16 %v55_v47, %v54_v46  ;;  %v1022_v52 = vpack.c.bf16 %v153_v51, %v152_v50  ;;  %v154_v54 = vld [vmem:[%s1380_s5 + $0x10] sm:$0xff]  ;;  %v155_v55 = vld [vmem:[%s1380_s5 + $0x18] sm:$0xff]  ;;  %v819_v59 = vld [vmem:[%s1381_s2] ss:$0 sm:$0xff]  ;;  %s1076_s2 = smov 96  }
   0xe   :  { %1002 = vmatprep.subr.bf16.mxu0 %v1001_v20  ;;  %v1025_v56 = vpack.c.bf16 %v155_v55, %v154_v54  ;;  %v150_v63 = vld [vmem:[%s1382_s3] sm:$0xff]  ;;  %v406_v21 = vld [vmem:[%s1385_s7 + $0x8] sm:$0xff]  ;;  %v407_v25 = vld [vmem:[%s1385_s7 + $0x10] sm:$0xff] }
   0xf   :  { %v820_v2 = vld [vmem:[%s1383_s6] ss:$0 sm:$0xff]  ;;  %s1077_s6 = smov 64   ;;  %v493_v29 = vld [vmem:[%s1386_s9 + $0x8] sm:$0xff]  ;;  %v495_v34 = vld [vmem:[%s1386_s9 + $0x18] sm:$0xff] }
  0x10   :  { %v315_v8 = vld [vmem:[%s1384_s4] sm:$0xff]  ;;  %v830_v37 = vld [vmem:[%s1386_s9 + $0x28] sm:$0xff]  ;;  %v836_v51 = vld [vmem:[%s1386_s9 + $0x50] sm:$0xff] }
  0x11   :  { %1004 = vmatpush3.bf16.msra.mxu0 %v1003_v26  ;;  %v405_v20 = vld [vmem:[%s1385_s7] sm:$0xff]  ;;  %v408_v26 = vld [vmem:[%s1385_s7 + $0x18] sm:$0xff] }
  0x12   :  { %1006 = vmatprep.subr.bf16.mxu0 %v1005_v27  ;;  %v1028_v23 = vpack.c.bf16 %v406_v21, %v405_v20  ;;  %v1031_v27 = vpack.c.bf16 %v408_v26, %v407_v25  ;;  %v492_v28 = vld [vmem:[%s1386_s9] sm:$0xff] }
  0x13   :  { %v1034_v30 = vpack.c.bf16 %v493_v29, %v492_v28  ;;  %v829_v36 = vld [vmem:[%s1386_s9 + $0x20] sm:$0xff] }
  0x14   :  { %v1040_v42 = vpack.c.bf16 %v830_v37, %v829_v36  ;;  %v834_v47 = vld [vmem:[%s1386_s9 + $0x40] sm:$0xff] }
  0x15   :  { %1008 = vmatpush3.bf16.msra.mxu0 %v1007_v32  ;;  %v839_v55 = vld [vmem:[%s1386_s9 + $0x60] sm:$0xff] }
  0x16   :  { %1010 = vmatprep.subr.bf16.mxu0 %v1009_v33  ;;  %v494_v33 = vld [vmem:[%s1386_s9 + $0x10] sm:$0xff] }
  0x17   :  { %v1037_v35 = vpack.c.bf16 %v495_v34, %v494_v33 }
  0x19   :  { %1012 = vmatpush3.bf16.msra.mxu0 %v1011_v38 }
  0x1a   :  { %1014 = vmatprep.subr.bf16.mxu0 %v1013_v39  ;;  %v826_v39 = vld [vmem:[%s1387_s8] ss:$0 sm:$0xff] }
  0x1d   :  { %1016 = vmatpush3.bf16.msra.mxu0 %v1015_v44  ;;  %v831_v44 = vld [vmem:[%s1386_s9 + $0x30] sm:$0xff] }
  0x1e   :  { %1018 = vmatprep.subr.bf16.mxu0 %v1017_v45  ;;  %v832_v45 = vld [vmem:[%s1386_s9 + $0x38] sm:$0xff] }
  0x1f   :  { %v1043_v46 = vpack.c.bf16 %v832_v45, %v831_v44 }
  0x21   :  { %1020 = vmatpush3.bf16.msra.mxu0 %v1019_v48  ;;  %v835_v48 = vld [vmem:[%s1386_s9 + $0x48] sm:$0xff] }
  0x22   :  { %1021 = vmatprep.subr.bf16.mxu0 %v1073_v53 }
  0x24   :  { %144 = vmatmul.mubr.f32.vlgmr.msra.gmra.mrb[0].mxu0 %v38_v49  ;;  %v1046_v49 = vpack.c.bf16 %v835_v48, %v834_v47 }
  0x25   :  { %1023 = vmatpush3.bf16.msra.mxu0 %v1022_v52  ;;  %921 = vmatprep.mubr.msk.f32.mxu0 %vm1074_vm0, %v1075_v57  ;;  %v837_v52 = vld [vmem:[%s1386_s9 + $0x58] sm:$0xff] }
  0x26   :  { %1024 = vmatprep.subr.bf16.mxu0 %v1073_v53  ;;  %v1049_v54 = vpack.c.bf16 %v837_v52, %v836_v51 }
  0x29   :  { %1026 = vmatpush3.bf16.msra.mxu0 %v1025_v56  ;;  %v840_v56 = vld [vmem:[%s1386_s9 + $0x68] sm:$0xff] }
  0x2a   :  { %924 = vmatprep.subr.mxu0 %v1075_v57 }
  0xf7   :  { %v876_v58 = vpop.f32.mrb[0].mxu0 }
  0xf8   :  { %v877_v60 = vpop.f32.mrb[1].mxu0 }
  0xf9   :  { %v878_v61 = vadd.f32 %v877_v60, %v876_v58  ;;  %v1052_v58 = vpack.c.bf16 %v840_v56, %v839_v55  ;;  %v841_v60 = vld [vmem:[%s1386_s9 + $0x70] sm:$0xff] }
  0xfb   :  { %v146_v62 = vadd.f32 %v878_v61, %v819_v59  ;;  %v842_v61 = vld [vmem:[%s1386_s9 + $0x78] sm:$0xff] }
  0xfd   :  { %v149_v0 = vmax.f32 %v146_v62, 0.0  ;;  %v1055_v62 = vpack.c.bf16 %v842_v61, %v841_v60 }
  0xff   :  { %v1266_v1 = vadd.f32 %v150_v63, %v149_v0  ;;  %v828_v0 = vld [vmem:[%s1388_s10] ss:$0 sm:$0xff] }
 0x101   :  { %922 = vmatmul.mubr.msk.f32.vlgmr.msra.gmra.mrb[2].mxu0 %vm163_vm1, %v1266_v1 }
 0x102   :  { %926 = vmatprep.mubr.msk.f32.mxu0 %vm1074_vm0, %v1075_v57 }
 0x1d4   :  { %v233_v3 = vpop.f32.mrb[2].mxu0 }
 0x1d5   :  { %v234_v4 = vadd.f32 %v820_v2, %v233_v3  ;;  %v923_v5 = vpop.f32.mrb[3].mxu0 }
 0x1d7   :  { %238 = vrot.lane.b32.xlu0 %v234_v4, %s1076_s2 }
 0x249   :  { %v239_v6 = vpop.permute.xlu0 %238 }
 0x24a   :  { %925 = vmatpush3.xpose.msk.msra.mxu0 %vm163_vm1, %v239_v6 }
 0x24d   :  { %927 = vmatmul.mubr.msk.f32.vlgmr.msra.gmra.mrb[4].mxu0 %vm163_vm1, %v234_v4 }
 0x320   :  { %v310_v7 = vpop.f32.mrb[4].mxu0 }
 0x321   :  { %v314_v9 = vmul.f32 0.17677669, %v310_v7  ;;  %v928_v10 = vpop.f32.mrb[5].mxu0 }
 0x323   :  { %v316_v11 = vadd.f32 %v315_v8, %v314_v9 }
 0x325   :  { %v318_v12 = vsel %vm317_vm2, %v316_v11, -inf }
 0x326   :  { %319 = vmax.xlane.f32.xlu0 %v318_v12 }
 0x3b3   :  { %v320_v13 = vpop.xlane.xlu0 %319 }
 0x3b4   :  { %v321_v14 = vsub.f32 %v316_v11, %v320_v13 }
 0x3b6   :  { %v322_v15 = vmul.f32 1.442695, %v321_v14 }
 0x3b8   :  { %1069 = vpow2.f32 %v322_v15 }
 0x3c2   :  { %v1070_v16 = vpop.eup %1069 }
 0x3c3   :  { %v324_v17 = vsel %vm317_vm2, %v1070_v16, 0.0 }
 0x3c4   :  { %325 = vadd.xlane.f32.xlu1 %v324_v17 }
 0x3d5   :  { %329 = vrot.lane.b32.xlu1 %v234_v4, %s1077_s6 }
 0x451   :  { %v326_v18 = vpop.xlane.xlu1 %325 }
 0x452   :  { %1071 = vrcp.f32 %v326_v18 }
 0x455   :  { %v330_v19 = vpop.permute.xlu1 %329 }
 0x456   :  { %930 = vmatpush3.msra.mxu1 %v330_v19 }
 0x457   :  { %1027 = vmatprep.subr.bf16.mxu1 %v1073_v53 }
 0x45c   :  { %v1072_v22 = vpop.eup %1071 }
 0x45d   :  { %v328_v24 = vmul.f32 %v1072_v22, %v1070_v16 }
 0x45f   :  { %932 = vmatmul.mubr.msk.f32.vlgmr.msra.gmra.mrb[0].mxu1 %vm317_vm2, %v328_v24 }
 0x460   :  { %1029 = vmatpush3.bf16.msra.mxu1 %v1028_v23  ;;  %942 = vmatprep.mubr.msk.f32.mxu1 %vm1074_vm0, %v1075_v57 }
 0x461   :  { %1030 = vmatprep.subr.bf16.mxu1 %v1073_v53 }
 0x464   :  { %1032 = vmatpush3.bf16.msra.mxu1 %v1031_v27 }
 0x465   :  { %1033 = vmatprep.subr.bf16.mxu1 %v1073_v53 }
 0x532   :  { %v401_v31 = vpop.f32.mrb[0].mxu1 }
 0x533   :  { %v933_v32 = vpop.f32.mrb[1].mxu1  ;;  %943 = vmatmul.mubr.msk.f32.vlgmr.msra.gmra.mrb[2].mxu1 %vm163_vm1, %v401_v31 }
 0x534   :  { %1035 = vmatpush3.bf16.msra.mxu1 %v1034_v30  ;;  %953 = vmatprep.mubr.msk.f32.mxu1 %vm1074_vm0, %v1075_v57 }
 0x535   :  { %1036 = vmatprep.subr.bf16.mxu1 %v1073_v53 }
 0x538   :  { %1038 = vmatpush3.bf16.msra.mxu1 %v1037_v35 }
 0x539   :  { %1039 = vmatprep.subr.bf16.mxu1 %v1073_v53 }
 0x606   :  { %v478_v38 = vpop.f32.mrb[2].mxu1 }
 0x607   :  { %v482_v40 = vadd.f32 %v478_v38, %v1266_v1  ;;  %v944_v41 = vpop.f32.mrb[3].mxu1 }
 0x609   :  { %v490_v43 = vadd.f32 %v826_v39, %v482_v40 }
 0x60b   :  { %954 = vmatmul.mubr.msk.f32.vlgmr.msra.gmra.mrb[4].mxu1 %vm163_vm1, %v490_v43  ;;  %v581_v50 = vrot.slane %v490_v43, 2  ;;  %v660_v59 = vrot.slane %v490_v43, 4  ;;  %v739_v63 = vrot.slane %v490_v43, 6 }
 0x60c   :  { %1041 = vmatpush3.bf16.msra.mxu1 %v1040_v42  ;;  %964 = vmatprep.mubr.msk.f32.mxu1 %vm1074_vm0, %v1075_v57 }
 0x60d   :  { %1042 = vmatprep.subr.bf16.mxu1 %v1073_v53 }
 0x610   :  { %1044 = vmatpush3.bf16.msra.mxu1 %v1043_v46 }
 0x611   :  { %1045 = vmatprep.subr.bf16.mxu1 %v1073_v53 }
 0x613   :  { %965 = vmatmul.mubr.msk.f32.vlgmr.msra.gmra.mrb[4].mxu1 %vm163_vm1, %v581_v50 }
 0x614   :  { %1047 = vmatpush3.bf16.msra.mxu1 %v1046_v49  ;;  %975 = vmatprep.mubr.msk.f32.mxu1 %vm1074_vm0, %v1075_v57 }
 0x615   :  { %1048 = vmatprep.subr.bf16.mxu1 %v1073_v53 }
 0x618   :  { %1050 = vmatpush3.bf16.msra.mxu1 %v1049_v54 }
 0x619   :  { %1051 = vmatprep.subr.bf16.mxu1 %v1073_v53 }
 0x61b   :  { %976 = vmatmul.mubr.msk.f32.vlgmr.msra.gmra.mrb[4].mxu1 %vm163_vm1, %v660_v59 }
 0x61c   :  { %1053 = vmatpush3.bf16.msra.mxu1 %v1052_v58  ;;  %986 = vmatprep.mubr.msk.f32.mxu1 %vm1074_vm0, %v1075_v57 }
 0x61d   :  { %1054 = vmatprep.subr.bf16.mxu1 %v1073_v53 }
 0x620   :  { %1056 = vmatpush3.bf16.msra.mxu1 %v1055_v62 }
 0x623   :  { %987 = vmatmul.mubr.msk.f32.vlgmr.msra.gmra.mrb[4].mxu1 %vm163_vm1, %v739_v63 }
 0x6f6   :  { %v808_v1 = vpop.f32.mrb[4].mxu1 }
 0x6f7   :  { %v1057_v2 = vadd.f32 %v828_v0, %v808_v1  ;;  %v988_v3 = vpop.f32.mrb[5].mxu1 }
 0x6f9   :  { %814 = vst.msk [vmem:[%s1389_s11] sm:$0x3] %vm813_vm3, %v1057_v2 }

</bundles_post_ra>
